<compile_context>
chip_gen: v5e
topology: v5e:2x2
jax: 0.10.0
libtpu: 0.0.40
codegen_flags: <defaults>
</compile_context>

<pallas_src>
import functools

import jax
import jax.numpy as jnp
from jax.experimental import pallas as pl
from jax.experimental.pallas import tpu as pltpu

LANE = 128  # TPU lane width; hidden/output feature dims are padded to this


def _round_up(n, m):
    return ((n + m - 1) // m) * m


def _mlp_kernel(x_ref, w1_ref, w_ref, b_ref, o_ref, *, scale, offset):
    """Fused 4-layer MLP on one (bm, F) batch tile.

    x_ref : (bm, F)        f32   batch tile
    w1_ref: (F, 128)       f32   input-layer weight (cols >= hidden are zero)
    w_ref : (3, 128, 128)  bf16  [hidden, hidden2, output] weights, zero-padded
    b_ref : (4, 1, 128)    f32   [b1, b2, b3, b4] biases, zero-padded
    o_ref : (bm, 128)      f32   sigmoid(z)*scale + offset, lane-dense store
    """
    # Layer 0: Linear only (reference applies no activation to the input layer).
    # K = F (tiny, e.g. 4): keep f32 operands here, bf16 buys nothing.
    h = jnp.dot(x_ref[...], w1_ref[...],
                preferred_element_type=jnp.float32) + b_ref[0]

    # Layer 1: Linear + relu  (bf16 MXU inputs, f32 accumulate + f32 elementwise).
    h = jnp.dot(h.astype(jnp.bfloat16), w_ref[0],
                preferred_element_type=jnp.float32) + b_ref[1]
    h = jnp.maximum(h, 0.0)

    # Layer 2: Linear + relu.
    h = jnp.dot(h.astype(jnp.bfloat16), w_ref[1],
                preferred_element_type=jnp.float32) + b_ref[2]
    h = jnp.maximum(h, 0.0)

    # Layer 3: Linear + sigmoid + range rescale fused into the single store.
    z = jnp.dot(h.astype(jnp.bfloat16), w_ref[2],
                preferred_element_type=jnp.float32) + b_ref[3]
    o_ref[...] = jax.nn.sigmoid(z) * scale + offset


def _pack_params(params, input_shape, hidden_nodes, output_size):
    """Zero-pad to 128 lanes and pack into 3 operands (w1, weight slab, bias slab)."""
    hp = _round_up(max(hidden_nodes, output_size), LANE)  # 128 for the default net

    w1 = jnp.zeros((input_shape, hp), jnp.float32)
    w1 = w1.at[:, :hidden_nodes].set(params["w1"])

    def pad_w(w, rows, cols):
        out = jnp.zeros((hp, hp), jnp.float32)
        return out.at[:rows, :cols].set(w)

    w_slab = jnp.stack(
        [pad_w(params["w2"], hidden_nodes, hidden_nodes),
         pad_w(params["w3"], hidden_nodes, hidden_nodes),
         pad_w(params["w4"], hidden_nodes, output_size)],
        axis=0).astype(jnp.bfloat16)                       # (3, hp, hp) bf16

    def pad_b(b, cols):
        out = jnp.zeros((1, hp), jnp.float32)
        return out.at[:, :cols].set(jnp.reshape(b, (1, -1)))

    b_slab = jnp.stack(
        [pad_b(params["b1"], hidden_nodes),
         pad_b(params["b2"], hidden_nodes),
         pad_b(params["b3"], hidden_nodes),
         pad_b(params["b4"], output_size)],
        axis=0)                                            # (4, 1, hp) f32

    return w1, w_slab, b_slab, hp


def network_cont_forward(x, params, output_range, *, hidden_nodes=32, block_m=256):
    """Run the fused MLP kernel.

    x: (B, input_shape) float32
    params: dict with w1,b1,w2,b2,w3,b3,w4,b4 (weights stored as (in, out))
    output_range: (lo, hi) python floats
    """
    B, F = x.shape
    out_size = params["w4"].shape[1]
    lo, hi = float(output_range[0]), float(output_range[1])

    w1_p, w_slab, b_slab, hp = _pack_params(params, F, hidden_nodes, out_size)

    # Batch tile: multiple of 8 sublanes; pad B up to a whole number of tiles.
    bm = min(_round_up(block_m, 8), _round_up(B, 8))
    b_pad = _round_up(B, bm)
    if b_pad != B:
        x = jnp.pad(x, ((0, b_pad - B), (0, 0)))

    grid = (b_pad // bm,)
    kernel = functools.partial(_mlp_kernel, scale=hi - lo, offset=lo)

    out_padded = pl.pallas_call(
        kernel,
        out_shape=jax.ShapeDtypeStruct((b_pad, hp), jnp.float32),
        grid=grid,
        in_specs=[
            pl.BlockSpec((bm, F), lambda i: (i, 0)),          # x: streamed per tile
            pl.BlockSpec((F, hp), lambda i: (0, 0)),          # w1: resident
            pl.BlockSpec((3, hp, hp), lambda i: (0, 0, 0)),   # w2/w3/w4 slab: resident
            pl.BlockSpec((4, 1, hp), lambda i: (0, 0, 0)),    # bias slab: resident
        ],
        out_specs=pl.BlockSpec((bm, hp), lambda i: (i, 0)),
        compiler_params=pltpu.CompilerParams(
            dimension_semantics=("parallel",)),
    )(x, w1_p, w_slab, b_slab)

    # Padded rows / lanes hold garbage (sigmoid of zero-padded columns); slice them off.
    return out_padded[:B, :out_size]


def init_params(key, input_shape, output_size, hidden_nodes=32):
    """Deterministic synthetic init (uniform +-1/sqrt(fan_in), like torch default)."""
    ks = jax.random.split(key, 8)

    def linear(kw, kb, fan_in, fan_out):
        bound = 1.0 / jnp.sqrt(fan_in)
        w = jax.random.uniform(kw, (fan_in, fan_out), jnp.float32, -bound, bound)
        b = jax.random.uniform(kb, (1, fan_out), jnp.float32, -bound, bound)
        return w, b

    w1, b1 = linear(ks[0], ks[1], input_shape, hidden_nodes)
    w2, b2 = linear(ks[2], ks[3], hidden_nodes, hidden_nodes)
    w3, b3 = linear(ks[4], ks[5], hidden_nodes, hidden_nodes)
    w4, b4 = linear(ks[6], ks[7], hidden_nodes, output_size)
    return dict(w1=w1, b1=b1, w2=w2, b2=b2, w3=w3, b3=b3, w4=w4, b4=b4)


def reference_forward(x, params, output_range):
    lo, hi = output_range
    h = x @ params["w1"] + params["b1"]
    h = jax.nn.relu(h @ params["w2"] + params["b2"])
    h = jax.nn.relu(h @ params["w3"] + params["b3"])
    z = jax.nn.sigmoid(h @ params["w4"] + params["b4"])
    return z * (hi - lo) + lo


if __name__ == "__main__":
    key = jax.random.PRNGKey(0)
    k_param, k_x = jax.random.split(key)

    batch = 50            # deliberately not a multiple of the tile to exercise padding
    input_shape = 4       # observation dim
    output_size = 2       # continuous action dim
    hidden_nodes = 32
    output_range = (-1.0, 1.0)

    params = init_params(k_param, input_shape, output_size, hidden_nodes)
    x = jax.random.normal(k_x, (batch, input_shape), dtype=jnp.float32)

    # Small block_m so the demo runs a multi-step batch grid (4 tiles of 16 rows).
    out = network_cont_forward(x, params, output_range,
                               hidden_nodes=hidden_nodes, block_m=16)
    out = jax.block_until_ready(out)

    ref = reference_forward(x, params, output_range)
    assert out.shape == (batch, output_size)
    # bf16 MXU inputs for the 128-wide layers -> allow a small tolerance.
    assert jnp.allclose(out, ref, atol=2e-2, rtol=2e-2), float(jnp.max(jnp.abs(out - ref)))

    print("KERNEL_OK")
</pallas_src>

<mosaic_0001>
module attributes {stable_mosaic.version = 11 : i64} {
  func.func @_mlp_kernel(%arg0: i32, %arg1: memref<16x4xf32, #tpu.memory_space<vmem>>, %arg2: memref<4x128xf32, #tpu.memory_space<vmem>>, %arg3: memref<3x128x128xbf16, #tpu.memory_space<vmem>>, %arg4: memref<4x1x128xf32, #tpu.memory_space<vmem>>, %arg5: memref<16x128xf32, #tpu.memory_space<vmem>>) attributes {dimension_semantics = [#tpu.dimension_semantics<parallel>], iteration_bounds = array<i64: 4>, scalar_prefetch = 0 : i64, scratch_operands = 0 : i64, tpu.core_type = #tpu.core_type<tc>, window_params = [{transform_indices = @transform_0, window_bounds = array<i64: 16, 4>}, {pipeline_mode = #tpu.pipeline_mode<synchronous>, transform_indices = @transform_1, window_bounds = array<i64: 4, 128>}, {pipeline_mode = #tpu.pipeline_mode<synchronous>, transform_indices = @transform_2, window_bounds = array<i64: 3, 128, 128>}, {pipeline_mode = #tpu.pipeline_mode<synchronous>, transform_indices = @transform_3, window_bounds = array<i64: 4, 1, 128>}, {transform_indices = @transform_4, window_bounds = array<i64: 16, 128>}]} {
    %c0 = arith.constant 0 : index
    %c0_0 = arith.constant 0 : index
    %0 = vector.load %arg1[%c0, %c0_0] : memref<16x4xf32, #tpu.memory_space<vmem>>, vector<16x4xf32>
    %c0_1 = arith.constant 0 : index
    %c0_2 = arith.constant 0 : index
    %1 = vector.load %arg2[%c0_1, %c0_2] : memref<4x128xf32, #tpu.memory_space<vmem>>, vector<4x128xf32>
    %cst = arith.constant dense<0.000000e+00> : vector<16x128xf32>
    %2 = tpu.matmul %0, %1, %cst {dimension_numbers = #tpu.dot_dimension_numbers<[1], [0], [0], [1], [0, 0, 1, 1], [], []>} : vector<16x4xf32>, vector<4x128xf32>, vector<16x128xf32> -> vector<16x128xf32>
    %c0_3 = arith.constant 0 : index
    %c0_4 = arith.constant 0 : index
    %c0_5 = arith.constant 0 : index
    %3 = vector.load %arg4[%c0_3, %c0_4, %c0_5] : memref<4x1x128xf32, #tpu.memory_space<vmem>>, vector<1x1x128xf32>
    %4 = vector.shape_cast %3 : vector<1x1x128xf32> to vector<1x128xf32>
    %5 = vector.broadcast %4 : vector<1x128xf32> to vector<16x128xf32>
    %6 = arith.addf %2, %5 : vector<16x128xf32>
    %7 = arith.truncf %6 : vector<16x128xf32> to vector<16x128xbf16>
    %c0_6 = arith.constant 0 : index
    %c0_7 = arith.constant 0 : index
    %c0_8 = arith.constant 0 : index
    %8 = vector.load %arg3[%c0_6, %c0_7, %c0_8] : memref<3x128x128xbf16, #tpu.memory_space<vmem>>, vector<1x128x128xbf16>
    %9 = vector.shape_cast %8 : vector<1x128x128xbf16> to vector<128x128xbf16>
    %cst_9 = arith.constant dense<0.000000e+00> : vector<16x128xf32>
    %10 = tpu.matmul %7, %9, %cst_9 {dimension_numbers = #tpu.dot_dimension_numbers<[1], [0], [0], [1], [0, 0, 1, 1], [], []>} : vector<16x128xbf16>, vector<128x128xbf16>, vector<16x128xf32> -> vector<16x128xf32>
    %c1 = arith.constant 1 : index
    %c0_10 = arith.constant 0 : index
    %c0_11 = arith.constant 0 : index
    %11 = vector.load %arg4[%c1, %c0_10, %c0_11] : memref<4x1x128xf32, #tpu.memory_space<vmem>>, vector<1x1x128xf32>
    %12 = vector.shape_cast %11 : vector<1x1x128xf32> to vector<1x128xf32>
    %13 = vector.broadcast %12 : vector<1x128xf32> to vector<16x128xf32>
    %14 = arith.addf %10, %13 : vector<16x128xf32>
    %cst_12 = arith.constant 0.000000e+00 : f32
    %15 = vector.broadcast %cst_12 : f32 to vector<16x128xf32>
    %16 = arith.maximumf %14, %15 : vector<16x128xf32>
    %17 = arith.truncf %16 : vector<16x128xf32> to vector<16x128xbf16>
    %c1_13 = arith.constant 1 : index
    %c0_14 = arith.constant 0 : index
    %c0_15 = arith.constant 0 : index
    %18 = vector.load %arg3[%c1_13, %c0_14, %c0_15] : memref<3x128x128xbf16, #tpu.memory_space<vmem>>, vector<1x128x128xbf16>
    %19 = vector.shape_cast %18 : vector<1x128x128xbf16> to vector<128x128xbf16>
    %cst_16 = arith.constant dense<0.000000e+00> : vector<16x128xf32>
    %20 = tpu.matmul %17, %19, %cst_16 {dimension_numbers = #tpu.dot_dimension_numbers<[1], [0], [0], [1], [0, 0, 1, 1], [], []>} : vector<16x128xbf16>, vector<128x128xbf16>, vector<16x128xf32> -> vector<16x128xf32>
    %c2 = arith.constant 2 : index
    %c0_17 = arith.constant 0 : index
    %c0_18 = arith.constant 0 : index
    %21 = vector.load %arg4[%c2, %c0_17, %c0_18] : memref<4x1x128xf32, #tpu.memory_space<vmem>>, vector<1x1x128xf32>
    %22 = vector.shape_cast %21 : vector<1x1x128xf32> to vector<1x128xf32>
    %23 = vector.broadcast %22 : vector<1x128xf32> to vector<16x128xf32>
    %24 = arith.addf %20, %23 : vector<16x128xf32>
    %cst_19 = arith.constant 0.000000e+00 : f32
    %25 = vector.broadcast %cst_19 : f32 to vector<16x128xf32>
    %26 = arith.maximumf %24, %25 : vector<16x128xf32>
    %27 = arith.truncf %26 : vector<16x128xf32> to vector<16x128xbf16>
    %c2_20 = arith.constant 2 : index
    %c0_21 = arith.constant 0 : index
    %c0_22 = arith.constant 0 : index
    %28 = vector.load %arg3[%c2_20, %c0_21, %c0_22] : memref<3x128x128xbf16, #tpu.memory_space<vmem>>, vector<1x128x128xbf16>
    %29 = vector.shape_cast %28 : vector<1x128x128xbf16> to vector<128x128xbf16>
    %cst_23 = arith.constant dense<0.000000e+00> : vector<16x128xf32>
    %30 = tpu.matmul %27, %29, %cst_23 {dimension_numbers = #tpu.dot_dimension_numbers<[1], [0], [0], [1], [0, 0, 1, 1], [], []>} : vector<16x128xbf16>, vector<128x128xbf16>, vector<16x128xf32> -> vector<16x128xf32>
    %c3 = arith.constant 3 : index
    %c0_24 = arith.constant 0 : index
    %c0_25 = arith.constant 0 : index
    %31 = vector.load %arg4[%c3, %c0_24, %c0_25] : memref<4x1x128xf32, #tpu.memory_space<vmem>>, vector<1x1x128xf32>
    %32 = vector.shape_cast %31 : vector<1x1x128xf32> to vector<1x128xf32>
    %33 = vector.broadcast %32 : vector<1x128xf32> to vector<16x128xf32>
    %34 = arith.addf %30, %33 : vector<16x128xf32>
    %35 = arith.negf %34 : vector<16x128xf32>
    %36 = math.exp %35 : vector<16x128xf32>
    %cst_26 = arith.constant 1.000000e+00 : f32
    %37 = vector.broadcast %cst_26 : f32 to vector<16x128xf32>
    %38 = arith.addf %37, %36 : vector<16x128xf32>
    %39 = arith.divf %37, %38 : vector<16x128xf32>
    %cst_27 = arith.constant 2.000000e+00 : f32
    %40 = vector.broadcast %cst_27 : f32 to vector<16x128xf32>
    %41 = arith.mulf %39, %40 : vector<16x128xf32>
    %cst_28 = arith.constant -1.000000e+00 : f32
    %42 = vector.broadcast %cst_28 : f32 to vector<16x128xf32>
    %43 = arith.addf %41, %42 : vector<16x128xf32>
    %c0_29 = arith.constant 0 : index
    %c0_30 = arith.constant 0 : index
    %44 = vector.load %arg5[%c0_29, %c0_30] : memref<16x128xf32, #tpu.memory_space<vmem>>, vector<16x128xf32>
    tpu.vector_store %arg5[%c0_29, %c0_30], %43 {strides = array<i32>} : memref<16x128xf32, #tpu.memory_space<vmem>>, vector<16x128xf32>,
    return
  }
  func.func @transform_0(%arg0: i32) -> (i32, i32) {
    %c0_i32 = arith.constant 0 : i32
    %c0_i32_0 = arith.constant 0 : i32
    return %arg0, %c0_i32 : i32, i32
  }
  func.func @transform_1(%arg0: i32) -> (i32, i32) {
    %c0_i32 = arith.constant 0 : i32
    %c0_i32_0 = arith.constant 0 : i32
    %c0_i32_1 = arith.constant 0 : i32
    return %c0_i32, %c0_i32_0 : i32, i32
  }
  func.func @transform_2(%arg0: i32) -> (i32, i32, i32) {
    %c0_i32 = arith.constant 0 : i32
    %c0_i32_0 = arith.constant 0 : i32
    %c0_i32_1 = arith.constant 0 : i32
    %c0_i32_2 = arith.constant 0 : i32
    return %c0_i32, %c0_i32_0, %c0_i32_1 : i32, i32, i32
  }
  func.func @transform_3(%arg0: i32) -> (i32, i32, i32) {
    %c0_i32 = arith.constant 0 : i32
    %c0_i32_0 = arith.constant 0 : i32
    %c0_i32_1 = arith.constant 0 : i32
    %c0_i32_2 = arith.constant 0 : i32
    return %c0_i32, %c0_i32_0, %c0_i32_1 : i32, i32, i32
  }
  func.func @transform_4(%arg0: i32) -> (i32, i32) {
    %c0_i32 = arith.constant 0 : i32
    %c0_i32_0 = arith.constant 0 : i32
    return %arg0, %c0_i32 : i32, i32
  }
}

</mosaic_0001>

<bundles_post_ra>
// kernel: tpu_custom_call.1
= control target key start
LH: loop header
LB: loop body
LE: loop exit
PB: predicated region body
PF: predicated region fallthrough
CT: control target
= control target key end

     0   :  { %9 = vsyncpa [#allocation3], 0  ;;  %s1099_s0 = inlined_call_operand.vmem [shape: f32[64,4], index: 0, kind: input, shape index: {}]   ;;  %s1100_s1 = inlined_call_operand.vmem [shape: f32[4,128], index: 1, kind: input, shape index: {}]   ;;  %s1101_s2 = inlined_call_operand.hbm [shape: bf16[3,128,128], index: 2, kind: input, shape index: {}]   ;;  %s1102_s3 = inlined_call_operand.vmem [shape: f32[4,1,128], index: 3, kind: input, shape index: {}]   ;;  %s1103_s4 = inlined_call_operand.hbm [shape: f32[64,128], index: 4, kind: output, shape index: {}]  }
   0x1   :  { %10 = vsyncpa [#allocation4], 0 }
   0x2   :  { %12 = vsyncpa [#allocation4 + $0x1], 0  ;;  %s986_s15 = smov 0   ;;  %s988_s16 = smov 0  }
   0x3   :  { %s990_s17 = smov 0   ;;  %s992_s18 = smov 0  }
   0x4 LB: > { %s1007_s19 = sadd.s32 4294967295, %s954_s18   ;;  %s649_s20 = sadd.s32 4294967294, %s954_s18   ;;  %s954_s18 = sphi %s992_s18, %s1109_s18   ;;  %s950_s17 = sphi %s990_s17, %s1108_s17   ;;  %s946_s16 = sphi %s988_s16, %s1107_s16   ;;  %s942_s15 = sphi %s986_s15, %s1106_s15  }
   0x5   : > { %s1011_s21 = sadd.s32 1, %s954_s18   ;;  %s114_s22 = sadd.s32 1, %s950_s17 }
   0x6   : > { %s111_s23 = ssub.s32 %s954_s18, %s1011_s21  ;;  %p124_p0 = scmp.ne.s32.totalorder %s950_s17, %s946_s16 }
   0x7   : > { %p112_p1 = scmp.eq.s32.totalorder %s111_s23, 0  ;;  %p125_p2 = scmp.eq.s32.totalorder %s1007_s19, 3 }
   0x8   : > { %p130_p3 = scmp.ne.s32.totalorder %s946_s16, %s942_s15  ;;  %p131_p4 = scmp.eq.s32.totalorder %s649_s20, 3 }
   0x9   : > { %s1022_s24 = scalar_select %p112_p1, %s950_s17, %s114_s22  }
   0xa   : > { %p1024_p5 = por %p125_p2, %p124_p0  ;;  %p1028_p6 = por %p131_p4, %p130_p3 }
   0xb   : > { %p650_p7 = scmp.ge.s32.totalorder %s954_s18, 1  ;;  %p138_p8 = scmp.lt.s32.totalorder %s954_s18, 5 }
   0xc   : > { %p806_p9 = scmp.eq.s32.totalorder %s1007_s19, 0  ;;  %s152_s29 = sshll.u32 %s1101_s2, 4  ;;  %s153_s29 = int_to_ptr.hbm [resolvable:$true] %s152_s29 }
   0xd   : > { %p139_p10 = pnand %p650_p7, %p138_p8  ;;  %s956_s30 = smov [#allocation2]  }
   0xe   : > { %s154_s5 = sshll.u32 %s956_s30, 4  ;;  %s957_s6 = smov 64   ;;  %s155_s5 = int_to_ptr.vmem [resolvable:$true] %s154_s5 }
   0xf   : > { %p798_p11 = pneg %p139_p10  ;;  %s958_s7 = smov 4  }
  0x10   : > { %182 = sbr.rel (%p139_p10) target bundleno = 631 (0x277), region = 36 }
  0x11   : > { %p799_p12 = pnand %p806_p9, %p798_p11 }
  0x13   : > { %801 = dma.hbm_to_vmem [thread:$0]  (!%p799_p12), %s153_s29, 3072, %s155_s5, [#allocation3], %s957_s6, %s957_s6, %s958_s7  }
  0x15   : > { %933 = dma.done.wait (%p806_p9), [#allocation3], 3072  }
  0x16   : > { %935 = vsyncadd (%p806_p9), [#allocation3], 4294964224  ;;  %s656_s8 = sshll.u32 %s1007_s19, 1  ;;  %vm230_vm0 = vcmask 1043456   ;;  %vm223_vm1 = vcmask 31744   ;;  %v774_v2 = vld [vmem:[#allocation2 + $0x38] sm:$0xff] }
  0x17   : > { %p210_p13 = scmp.lt.s32.totalorder %s656_s8, 7  ;;  %v218_v0 = vld [vmem:[%s1100_s1] sm:$0xf]  ;;  %327 = vmatpush.bf16.msra.mxu1 %v774_v2  ;;  %v773_v3 = vld [vmem:[#allocation2 + $0x30] sm:$0xff]  ;;  %v772_v5 = vld [vmem:[#allocation2 + $0x28] sm:$0xff]  ;;  %s206_s6 = sand.u32 1, %s946_s16  }
  0x18   : > { %658 = vmatpush.msk.msra.mxu0 %vm230_vm0, %v218_v0  ;;  %v771_v6 = vld [vmem:[#allocation2 + $0x20] sm:$0xff]  ;;  %v770_v7 = vld [vmem:[#allocation2 + $0x18] sm:$0xff]  ;;  %v769_v8 = vld [vmem:[#allocation2 + $0x10] sm:$0xff]  ;;  %s655_s7 = sshll.u32 %s206_s6, 4  ;;  %s560_s14 = scalar_lea.sflag [#allocation4], %s206_s6 }
  0x19   : > { %s1111_s8 = smov (!%p210_p13, %s656_s8), 7  ;;  %v768_v9 = vld [vmem:[#allocation2 + $0x8] sm:$0xff]  ;;  %v767_v10 = vld [vmem:[#allocation2] sm:$0xff]  ;;  %v782_v11 = vld [vmem:[#allocation2 + $0x78] sm:$0xff]  ;;  %s908_s28 = scalar_lea.hbm %s1103_s4, 64 }
  0x1a   : > { %s657_s9 = sshll.u32 %s1111_s8, 3  ;;  %414 = vmatpush.bf16.msra.mxu2 %v782_v11  ;;  %v781_v12 = vld [vmem:[#allocation2 + $0x70] sm:$0xff]  ;;  %v780_v13 = vld [vmem:[#allocation2 + $0x68] sm:$0xff]  ;;  %v779_v14 = vld [vmem:[#allocation2 + $0x60] sm:$0xff]  ;;  %s791_s8 = sshll.u32 %s1007_s19, 4 }
  0x1b   : > { %s213_s12 = scalar_lea.vmem %s1099_s0, %s657_s9  ;;  %328 = vmatpush.bf16.msra.mxu1 %v773_v3  ;;  %v846_v16 = vld [vmem:[%s1102_s3] ss:$0 sm:$0xff]  ;;  %v778_v21 = vld [vmem:[#allocation2 + $0x58] sm:$0xff]  ;;  %v777_v22 = vld [vmem:[#allocation2 + $0x50] sm:$0xff]  ;;  %s571_s11 = scalar_lea.hbm %s1103_s4, %s791_s8 }
  0x1c   : > { %v216_v1 = vld [vmem:[%s213_s12] sm:$0xff]  ;;  %v217_v4 = vld [vmem:[%s213_s12 + $0x8] sm:$0xff]  ;;  %v790_v25 = vld [vmem:[#allocation2 + $0xb8] sm:$0xff]  ;;  %s208_s12 = scalar_lea.vmem [#allocation5], %s655_s7  ;;  %s574_s13 = sshll.u32 %s571_s11, 4  ;;  %s575_s13 = int_to_ptr.hbm [resolvable:$true] %s574_s13 }
  0x1d   : > { %659 = vmatmul.msk.f32.vlgmr.msra.gmra.mxu0 %vm223_vm1, %v216_v1  ;;  %v776_v23 = vld [vmem:[#allocation2 + $0x48] sm:$0xff]  ;;  %v775_v24 = vld [vmem:[#allocation2 + $0x40] sm:$0xff]  ;;  %501 = vmatpush.bf16.msra.mxu3 %v790_v25  ;;  %v789_v26 = vld [vmem:[#allocation2 + $0xb0] sm:$0xff]  ;;  %s572_s19 = sshll.u32 %s208_s12, 4  ;;  %s902_s20 = sshra.s32 %s575_s13, 4  ;;  %s573_s19 = int_to_ptr.vmem [resolvable:$true] %s572_s19  ;;  %s903_s20 = int_to_ptr.hbm [resolvable:$true] %s902_s20 }
  0x1e   : > { %415 = vmatpush.bf16.msra.mxu2 %v781_v12  ;;  %v788_v27 = vld [vmem:[#allocation2 + $0xa8] sm:$0xff]  ;;  %v787_v28 = vld [vmem:[#allocation2 + $0xa0] sm:$0xff]  ;;  %v786_v37 = vld [vmem:[#allocation2 + $0x98] sm:$0xff]  ;;  %s904_s22 = scalar_lea.hbm %s903_s20, 16  ;;  %p909_p3 = scmp.lt.s32.totalorder %s903_s20, %s1103_s4 }
  0x1f   : > { %329 = vmatpush.bf16.msra.mxu1 %v772_v5  ;;  %v847_v30 = vld [vmem:[%s1102_s3 + $0x1] ss:$0 sm:$0xff]  ;;  %v785_v38 = vld [vmem:[#allocation2 + $0x90] sm:$0xff]  ;;  %v784_v39 = vld [vmem:[#allocation2 + $0x88] sm:$0xff]  ;;  %p905_p0 = scmp.ne.s32.totalorder %s903_s20, %s904_s22  ;;  %p910_p4 = scmp.lt.s32.totalorder %s908_s28, %s904_s22 }
  0x20   : > { %v783_v40 = vld [vmem:[#allocation2 + $0x80] sm:$0xff] }
  0x21   : > { %502 = vmatpush.bf16.msra.mxu3 %v789_v26  ;;  %v848_v42 = vld [vmem:[%s1102_s3 + $0x2] ss:$0 sm:$0xff]  ;;  %v849_v49 = vld [vmem:[%s1102_s3 + $0x3] ss:$0 sm:$0xff]  ;;  %p906_p1 = pnand %p905_p0, %p1024_p5  ;;  %p911_p7 = por %p910_p4, %p909_p3 }
  0x22   : > { %416 = vmatpush.bf16.msra.mxu2 %v780_v13 }
  0x23   : > { %330 = vmatpush.bf16.msra.mxu1 %v771_v6  ;;  %p907_p2 = pneg %p906_p1 }
  0x25   : > { %660 = vmatmul.msk.f32.gmra.mxu0 %vm223_vm1, %v217_v4  ;;  %503 = vmatpush.bf16.msra.mxu3 %v788_v27  ;;  %p912_p8 = pnand %p911_p7, %p907_p2 }
  0x26   : > { %417 = vmatpush.bf16.msra.mxu2 %v779_v14 }
  0x27   : > { %331 = vmatpush.bf16.msra.mxu1 %v770_v7 }
  0x29   : > { %504 = vmatpush.bf16.msra.mxu3 %v787_v28 }
  0x2a   : > { %418 = vmatpush.bf16.msra.mxu2 %v778_v21 }
  0x2b   : > { %332 = vmatpush.bf16.msra.mxu1 %v769_v8 }
  0x2d   : > { %505 = vmatpush.bf16.msra.mxu3 %v786_v37 }
  0x2e   : > { %419 = vmatpush.bf16.msra.mxu2 %v777_v22 }
  0x2f   : > { %333 = vmatpush.bf16.msra.mxu1 %v768_v9 }
  0x31   : > { %506 = vmatpush.bf16.msra.mxu3 %v785_v38 }
  0x32   : > { %420 = vmatpush.bf16.msra.mxu2 %v776_v23 }
  0x33   : > { %334 = vmatpush.bf16.msra.mxu1 %v767_v10 }
  0x35   : > { %507 = vmatpush.bf16.msra.mxu3 %v784_v39 }
  0x36   : > { %421 = vmatpush.bf16.msra.mxu2 %v775_v24 }
  0x39   : > { %508 = vmatpush.bf16.msra.mxu3 %v783_v40 }
  0x9a   : > { %v251_v15 = vpop.f32.mrf.mxu0 }
  0x9b   : > { %v252_v18 = vadd.f32 %v846_v16, %v251_v15 }
  0xa2   : > { %v254_v17 = vpop.f32.mrf.mxu0 }
  0xa3   : > { %v255_v19 = vadd.f32 %v846_v16, %v254_v17 }
  0xa5   : > { %v257_v20 = vpack.c.bf16 %v255_v19, %v252_v18 }
  0xa7   : > { %335 = vmatmul.bf16.vlgmr.msra.gmra.mxu1 %v257_v20 }
 0x124   : > { %v336_v29 = vpop.f32.mrf.mxu1 }
 0x125   : > { %v337_v31 = vadd.f32 %v847_v30, %v336_v29 }
 0x127   : > { %v341_v34 = vmax.f32 %v337_v31, 0.0 }
 0x12c   : > { %v338_v32 = vpop.f32.mrf.mxu1 }
 0x12d   : > { %v339_v33 = vadd.f32 %v847_v30, %v338_v32 }
 0x12f   : > { %v342_v35 = vmax.f32 %v339_v33, 0.0 }
 0x131   : > { %v343_v36 = vpack.c.bf16 %v342_v35, %v341_v34 }
 0x133   : > { %422 = vmatmul.bf16.vlgmr.msra.gmra.mxu2 %v343_v36 }
 0x1b6   : > { %v423_v41 = vpop.f32.mrf.mxu2 }
 0x1b7   : > { %v424_v43 = vadd.f32 %v848_v42, %v423_v41 }
 0x1b9   : > { %v428_v46 = vmax.f32 %v424_v43, 0.0 }
 0x1be   : > { %v425_v44 = vpop.f32.mrf.mxu2 }
 0x1bf   : > { %v426_v45 = vadd.f32 %v848_v42, %v425_v44 }
 0x1c1   : > { %v429_v47 = vmax.f32 %v426_v45, 0.0 }
 0x1c3   : > { %v430_v48 = vpack.c.bf16 %v429_v47, %v428_v46 }
 0x1c5   : > { %509 = vmatmul.bf16.vlgmr.msra.gmra.mxu3 %v430_v48 }
 0x248   : > { %v510_v50 = vpop.f32.mrf.mxu3 }
 0x249   : > { %v511_v51 = vadd.f32 %v849_v49, %v510_v50 }
 0x24b   : > { %v760_v52 = vmul.f32 -1.442695, %v511_v51 }
 0x24d   : > { %850 = vpow2.f32 %v760_v52 }
 0x250   : > { %v512_v53 = vpop.f32.mrf.mxu3 }
 0x251   : > { %v513_v54 = vadd.f32 %v849_v49, %v512_v53 }
 0x253   : > { %v851_v55 = vpop.eup %850  ;;  %v761_v56 = vmul.f32 -1.442695, %v513_v54 }
 0x254   : > { %v521_v57 = vadd.f32 1.0, %v851_v55 }
 0x255   : > { %852 = vpow2.f32 %v761_v56 }
 0x256   : > { %854 = vrcp.f32 %v521_v57  ;;  %v534_v63 = vand.u32 2147483648, %v521_v57  ;;  %v532_v1 = vand.u32 2147483647, %v521_v57  ;;  %vm528_vm3 = vweird.f32 %v521_v57 }
 0x258   : > { %v535_v4 = vor.u32 1.1754944e-38, %v534_v63  ;;  %vm533_vm5 = vcmp.eq.f32.partialorder %v532_v1, 8.507059e+37 }
 0x25b   : > { %v853_v58 = vpop.eup %852 }
 0x25c   : > { %v855_v59 = vpop.eup %854  ;;  %v522_v60 = vadd.f32 1.0, %v853_v58 }
 0x25d   : > { %v524_v61 = vmul.f32 %v855_v59, %v521_v57  ;;  %vm529_vm2 = vweird.f32 %v855_v59 }
 0x25e   : > { %856 = vrcp.f32 %v522_v60  ;;  %vm530_vm4 = vmor %vm528_vm3, %vm529_vm2  ;;  %v549_v10 = vand.u32 2147483648, %v522_v60  ;;  %v547_v13 = vand.u32 2147483647, %v522_v60  ;;  %vm543_vm7 = vweird.f32 %v522_v60 }
 0x25f   : > { %v525_v62 = vsub.f32 1.0, %v524_v61 }
 0x260   : > { %v550_v15 = vor.u32 1.1754944e-38, %v549_v10  ;;  %vm548_vm9 = vcmp.eq.f32.partialorder %v547_v13, 8.507059e+37 }
 0x261   : > { %v526_v0 = vmul.f32 %v855_v59, %v525_v62 }
 0x263   : > { %v527_v2 = vadd.f32 %v855_v59, %v526_v0 }
 0x264   : > { %v857_v3 = vpop.eup %856 }
 0x265   : > { %v531_v5 = vsel %vm530_vm4, %v855_v59, %v527_v2  ;;  %v539_v6 = vmul.f32 %v857_v3, %v522_v60  ;;  %vm544_vm6 = vweird.f32 %v857_v3 }
 0x266   : > { %v536_v7 = vsel %vm533_vm5, %v535_v4, %v531_v5  ;;  %vm545_vm8 = vmor %vm543_vm7, %vm544_vm6 }
 0x267   : > { %v553_v8 = vmul.f32 2.0, %v536_v7  ;;  %v540_v9 = vsub.f32 1.0, %v539_v6 }
 0x269   : > { %v555_v11 = vadd.f32 -1.0, %v553_v8  ;;  %v541_v12 = vmul.f32 %v857_v3, %v540_v9 }
 0x26b   : > { %v542_v14 = vadd.f32 %v857_v3, %v541_v12  ;;  %557 = vst [vmem:[%s208_s12] sm:$0xff] %v555_v11 }
 0x26d   : > { %v546_v16 = vsel %vm545_vm8, %v857_v3, %v542_v14 }
 0x26e   : > { %v551_v17 = vsel %vm548_vm9, %v550_v15, %v546_v16 }
 0x26f   : > { %v554_v18 = vmul.f32 2.0, %v551_v17 }
 0x271   : > { %v556_v19 = vadd.f32 -1.0, %v554_v18 }
 0x273   : > { %558 = vst [vmem:[%s208_s12 + $0x8] sm:$0xff] %v556_v19 }
 0x274   : > { %915 = shalt.err (!%p912_p8)
}
 0x275   : > { %s959_s5 = smov 128   ;;  %s960_s6 = smov 8  }
 0x276   : > { %796 = dma.vmem_to_hbm [thread:$0]  (%p1024_p5), %s573_s19, 256, %s575_s13, %s560_s14, %s959_s5, %s959_s5, %s960_s6  }
 0x277 PF: > { %p808_p9 = scmp.ge.s32.totalorder %s954_s18, 2  ;;  %s589_s7 = sand.u32 1, %s942_s15  }
 0x278   : > { %s590_s8 = scalar_lea.sflag [#allocation4], %s589_s7 }
 0x279   : > { %p803_p10 = pnand %p808_p9, %p1028_p6 }
 0x27b   : > { %p804_p11 = pneg %p803_p10 }
 0x27d   : > { %937 = dma.done.wait (%p804_p11), %s590_s8, 256  }
 0x27e   : > { %939 = vsyncadd (%p804_p11), %s590_s8, 4294967040  ;;  %p15_p12 = scmp.ge.s32.totalorder %s1011_s21, 6   ;;  %s1106_s15 = smov %s946_s16 }
 0x27f   : > { %s1107_s16 = smov %s950_s17  ;;  %s1108_s17 = smov %s1022_s24 }
 0x280   : > { %s1109_s18 = smov %s1011_s21  ;;  %17 = sbr.rel (!%p15_p12) target bundleno = 4 (0x4), region = 81 }
 0x285   :  { %596 = vsyncpa [#allocation3], 1 }
 0x286   :  { %598 = vsyncpa [#allocation3 + $0x1], 1 }
 0x287   :  { %599 = vsyncpa [#allocation4], 1 }
 0x288   :  { %601 = vsyncpa [#allocation4 + $0x1], 1 }

</bundles_post_ra>
